<compile_context>
chip_gen: v5e
topology: v5e:2x2
jax: 0.10.0
libtpu: 0.0.40
codegen_flags: <defaults>
</compile_context>

<pallas_src>
import jax
import jax.numpy as jnp
from jax.experimental import pallas as pl
from jax.experimental.pallas import tpu as pltpu

# ---------------- SMPL-X structural constants (synthetic small sizes) -------
NUM_BODY_JOINTS = 21
NUM_HAND_JOINTS = 15
NUM_JOINTS = 1 + NUM_BODY_JOINTS + 3 + 2 * NUM_HAND_JOINTS          # 55
NUM_BETAS = 10
NUM_EXPR = 10
NUM_PCA = 6
NUM_VERTS = 256                      # synthetic vertex count (real SMPL-X: 10475)
P_DIM = 9 * (NUM_JOINTS - 1)         # 486 pose-blend features
L_DIM = NUM_BETAS + NUM_EXPR         # 20 shape components
J_PAD = 64                           # joints padded to lane-friendly 64
TILE_V = 512                         # target vertex tile width at real V


def _round_up(x, m):
    return ((x + m - 1) // m) * m


def _choose_tile_v(v):
    """128-multiple vertex tile; keep >=2 tiles whenever V allows (v7x 2-TC split)."""
    vp = _round_up(v, 128)
    if vp >= 2 * TILE_V:
        return TILE_V
    if vp >= 256:
        return _round_up(vp // 2, 128)
    return 128


# ============================ Pallas kernel ==================================
def _lbs_fused_kernel(sc_ref, sdirs_ref, vt_ref, pf_ref, pdirs_ref,
                      ask_ref, wt_ref, tr_ref, verts_ref):
    """Fused shape blend + pose blend + skinning + 4x4 apply for one V tile.

    sc_ref:    (3*RP, 3*L)   block-diag shape components (f32)
    sdirs_ref: (3*L, TV)     shapedirs tile, coordinate-major rows c*L+l (f32)
    vt_ref:    (3, TV)       v_template tile, coordinate-major (f32)
    pf_ref:    (3*RP, 3*P)   block-diag pose features (bf16)
    pdirs_ref: (3*P, TV)     posedirs tile, coordinate-major rows c*P+p (bf16)
    ask_ref:   (4*RP, J_PAD) relative transforms, rows c*RP + b*3 + r (f32)
    wt_ref:    (J_PAD, TV)   lbs_weights^T tile, zero-padded joints (f32)
    tr_ref:    (RP, 1)       translation per output row (f32)
    verts_ref: (RP, TV)      out: posed vertices, rows b*3 + r
    """
    rp = tr_ref.shape[0]
    # Shape blend: tiny f32 dot, free under the posedirs DMA shadow.
    sdot = jnp.dot(sc_ref[...], sdirs_ref[...], preferred_element_type=jnp.float32)
    # Pose blend: dominant bf16 MXU dot covering batch + all 3 coordinates.
    pdot = jnp.dot(pf_ref[...], pdirs_ref[...], preferred_element_type=jnp.float32)
    # Skinning: one dot with M = 4*RP rows (all rows r, all cols c, all batch).
    Tt = jnp.dot(ask_ref[...], wt_ref[...], preferred_element_type=jnp.float32)
    vt = vt_ref[...]                                        # (3, TV)
    acc = Tt[3 * rp:4 * rp, :] + tr_ref[...]
    for c in range(3):                                      # static unroll, 8-aligned slices
        vposed_c = (vt[c:c + 1, :]                          # sublane-broadcast to RP rows
                    + sdot[c * rp:(c + 1) * rp, :]
                    + pdot[c * rp:(c + 1) * rp, :])
        acc = acc + Tt[c * rp:(c + 1) * rp, :] * vposed_c
    verts_ref[...] = acc


def lbs_fused(sc_stack, sdirs_blk, vt_blk, pf_stack, pdirs_blk,
              a_stack, wt_blk, tr_rows):
    n_tiles, l3, tile_v = sdirs_blk.shape
    p3 = pdirs_blk.shape[1]
    jp = wt_blk.shape[1]
    m3 = sc_stack.shape[0]
    m4 = a_stack.shape[0]
    rp = tr_rows.shape[0]
    v_pad = n_tiles * tile_v

    grid_spec = pltpu.PrefetchScalarGridSpec(
        num_scalar_prefetch=0, grid=(n_tiles,),
        in_specs=[
            pl.BlockSpec((m3, l3), lambda t: (0, 0)),               # constant shape lhs
            pl.BlockSpec((None, l3, tile_v), lambda t: (t, 0, 0)),  # shapedirs tile
            pl.BlockSpec((None, 3, tile_v), lambda t: (t, 0, 0)),   # v_template tile
            pl.BlockSpec((m3, p3), lambda t: (0, 0)),               # constant pose lhs (bf16)
            pl.BlockSpec((None, p3, tile_v), lambda t: (t, 0, 0)),  # posedirs tile (bf16)
            pl.BlockSpec((m4, jp), lambda t: (0, 0)),               # constant transforms
            pl.BlockSpec((None, jp, tile_v), lambda t: (t, 0, 0)),  # lbs weights tile
            pl.BlockSpec((rp, 1), lambda t: (0, 0)),                # constant transl
        ],
        out_specs=pl.BlockSpec((rp, tile_v), lambda t: (0, t)),
    )
    flops = int(2 * m3 * l3 * v_pad + 2 * m3 * p3 * v_pad
                + 2 * m4 * jp * v_pad + 10 * rp * v_pad)
    bytes_accessed = int(pdirs_blk.size * 2 + pf_stack.size * 2
                         + (sdirs_blk.size + vt_blk.size + wt_blk.size
                            + sc_stack.size + a_stack.size + tr_rows.size
                            + rp * v_pad) * 4)
    return pl.pallas_call(
        _lbs_fused_kernel,
        out_shape=jax.ShapeDtypeStruct((rp, v_pad), jnp.float32),
        grid_spec=grid_spec,
        compiler_params=pltpu.CompilerParams(
            dimension_semantics=("parallel",)),
        cost_estimate=pl.CostEstimate(flops=flops, transcendentals=0,
                                      bytes_accessed=bytes_accessed),
    )(sc_stack, sdirs_blk, vt_blk, pf_stack, pdirs_blk, a_stack, wt_blk, tr_rows)


# ================== wrapper-side layout builders (tiny, XLA) =================
def _blockdiag_rep3(x, rp):
    """x: (B, K) -> (3*rp, 3*K) with out[c*rp + b*3 + r, c*K + k] = x[b, k]."""
    b, k = x.shape
    xr = jnp.broadcast_to(x[:, None, :], (b, 3, k)).reshape(3 * b, k)
    xr = jnp.pad(xr, ((0, rp - 3 * b), (0, 0)))
    out = jnp.zeros((3, rp, 3, k), x.dtype)
    for c in range(3):
        out = out.at[c, :, c, :].set(xr)
    return out.reshape(3 * rp, 3 * k)


def _a_stack(a_rel, rp, b, jp):
    """A (B,J,4,4) -> (4*rp, jp) with rows c*rp + b*3 + r = A[b, :, r, c]."""
    j = a_rel.shape[1]
    a = jnp.transpose(a_rel[:, :, :3, :], (3, 0, 2, 1))     # (4, B, 3, J)
    a = a.reshape(4, 3 * b, j)
    a = jnp.pad(a, ((0, 0), (0, rp - 3 * b), (0, jp - j)))
    return a.reshape(4 * rp, jp)


# ============================ JAX glue (tiny O(J) work) ======================
def batch_rodrigues(rot_vecs):
    """(N, 3) axis-angle -> (N, 3, 3) rotation matrices (matches smplx)."""
    angle = jnp.linalg.norm(rot_vecs + 1e-8, axis=1, keepdims=True)     # (N, 1)
    rot_dir = rot_vecs / angle
    cos = jnp.cos(angle)[:, None, :]                                    # (N, 1, 1)
    sin = jnp.sin(angle)[:, None, :]
    rx, ry, rz = rot_dir[:, 0], rot_dir[:, 1], rot_dir[:, 2]
    zeros = jnp.zeros_like(rx)
    K = jnp.stack([zeros, -rz, ry, rz, zeros, -rx, -ry, rx, zeros],
                  axis=1).reshape(-1, 3, 3)
    ident = jnp.eye(3, dtype=rot_vecs.dtype)[None]
    return ident + sin * K + (1.0 - cos) * jnp.matmul(K, K)


def batch_rigid_transform(rot_mats, joints, parents):
    """rot_mats (B,J,3,3), joints (B,J,3) -> posed joints (B,J,3), rel 4x4 (B,J,4,4)."""
    B, J = joints.shape[:2]
    dtype = rot_mats.dtype
    joints_e = joints[..., None]                                       # (B,J,3,1)
    rel_joints = joints_e.at[:, 1:].add(-joints_e[:, parents[1:]])
    tm = jnp.concatenate([rot_mats, rel_joints], axis=-1)              # (B,J,3,4)
    bottom = jnp.broadcast_to(jnp.array([0., 0., 0., 1.], dtype=dtype), (B, J, 1, 4))
    tm = jnp.concatenate([tm, bottom], axis=-2)                        # (B,J,4,4)
    # TODO(synk): kinematic-chain recursion over `parents` is inherently sequential
    # and tiny (55 4x4 matmuls); kept in plain JAX rather than the Pallas kernel.
    chain = [tm[:, 0]]
    for i in range(1, J):
        chain.append(jnp.matmul(chain[parents[i]], tm[:, i]))
    transforms = jnp.stack(chain, axis=1)                              # (B,J,4,4)
    posed_joints = transforms[:, :, :3, 3]
    joints_h = jnp.concatenate([joints_e, jnp.zeros((B, J, 1, 1), dtype=dtype)], axis=2)
    init_bone = jnp.matmul(transforms, joints_h)                       # (B,J,4,1)
    init_bone = jnp.pad(init_bone, ((0, 0), (0, 0), (0, 0), (3, 0)))   # (B,J,4,4)
    rel_transforms = transforms - init_bone
    return posed_joints, rel_transforms


# ============================ Model =========================================
class BodyModelSMPLXPallas:
    """Pallas re-implementation of BodyModelSMPLX (synthetic, deterministic params)."""

    def __init__(self, key, num_verts=NUM_VERTS, use_pca=True, num_pca_comps=NUM_PCA):
        V = num_verts
        self.num_verts = V
        k = jax.random.split(key, 7)
        f32 = jnp.float32
        # canonical (smplx) layouts
        self.v_template = 0.1 * jax.random.normal(k[0], (V, 3), f32)
        self.shapedirs = 0.01 * jax.random.normal(k[1], (V, 3, L_DIM), f32)
        self.posedirs = 0.001 * jax.random.normal(k[2], (P_DIM, V, 3), f32)
        self.J_regressor = jax.nn.softmax(jax.random.normal(k[3], (NUM_JOINTS, V), f32), axis=-1)
        self.lbs_weights = jax.nn.softmax(4.0 * jax.random.normal(k[4], (V, NUM_JOINTS), f32), axis=-1)
        self.left_hand_components = 0.1 * jax.random.normal(k[5], (num_pca_comps, 3 * NUM_HAND_JOINTS), f32)
        self.right_hand_components = 0.1 * jax.random.normal(k[6], (num_pca_comps, 3 * NUM_HAND_JOINTS), f32)
        self.pose_mean = jnp.zeros((3 * NUM_JOINTS,), f32)             # flat hand means (synthetic)
        # synthetic kinematic tree: parents[i] < i
        self.parents = [-1] + [(i - 1) // 2 for i in range(1, NUM_JOINTS)]
        self.use_pca = use_pca
        self.num_pca_comps = num_pca_comps
        self.hand_pose_dim = num_pca_comps if use_pca else 3 * NUM_HAND_JOINTS

        # ---- fold the (linear) rest-joint regression so it never touches V at runtime ----
        self.j_template = self.J_regressor @ self.v_template                              # (J, 3)
        self.j_shapedirs = jnp.einsum('jv,vkl->jkl', self.J_regressor, self.shapedirs)    # (J, 3, L)

        # ---- kernel layouts: coordinate-major, V zero-padded & pre-blocked in HBM ----
        self.tile_v = _choose_tile_v(V)
        self.v_pad = _round_up(V, self.tile_v)
        n_tiles = self.v_pad // self.tile_v

        def block_cm(mat_cm, dtype):
            # (R, V) -> (n_tiles, R, tile_v): one contiguous slab per grid step.
            r = mat_cm.shape[0]
            m = jnp.pad(mat_cm, ((0, 0), (0, self.v_pad - V))).astype(dtype)
            return jnp.transpose(m.reshape(r, n_tiles, self.tile_v), (1, 0, 2))

        sdirs_cm = jnp.transpose(self.shapedirs, (1, 2, 0)).reshape(3 * L_DIM, V)
        pdirs_cm = jnp.transpose(self.posedirs, (2, 0, 1)).reshape(3 * P_DIM, V)
        wt_cm = jnp.pad(self.lbs_weights.T, ((0, J_PAD - NUM_JOINTS), (0, 0)))            # (64, V)

        self.sdirs_blk = block_cm(sdirs_cm, jnp.float32)           # (T, 3L, tv)
        # TODO(synk): per-generation int8 (v5e/v6e) / fp8-e4m3 (v7x) posedirs with
        # per-row scales would halve the dominant HBM stream again; kept bf16 here
        # for cross-generation portability and the validated 1e-3 tolerance.
        self.pdirs_blk = block_cm(pdirs_cm, jnp.bfloat16)          # (T, 3P, tv) dominant stream
        self.vt_blk = block_cm(self.v_template.T, jnp.float32)     # (T, 3, tv)
        self.wt_blk = block_cm(wt_cm, jnp.float32)                 # (T, 64, tv)

    def forward(self, betas=None, global_orient=None, transl=None, body_pose=None,
                left_hand_pose=None, right_hand_pose=None, expression=None,
                jaw_pose=None, leye_pose=None, reye_pose=None, **kwargs):
        dtype = jnp.float32
        model_vars = [betas, global_orient, body_pose, transl, expression,
                      left_hand_pose, right_hand_pose, jaw_pose, leye_pose, reye_pose]
        batch_size = 1
        for var in model_vars:
            if var is None:
                continue
            batch_size = max(batch_size, var.shape[0])

        def z(shape):
            return jnp.zeros(shape, dtype)

        if global_orient is None:
            global_orient = z((batch_size, 3))
        if body_pose is None:
            body_pose = z((batch_size, 3 * NUM_BODY_JOINTS))
        if left_hand_pose is None:
            left_hand_pose = z((batch_size, self.hand_pose_dim))
        if right_hand_pose is None:
            right_hand_pose = z((batch_size, self.hand_pose_dim))
        if jaw_pose is None:
            jaw_pose = z((batch_size, 3))
        if leye_pose is None:
            leye_pose = z((batch_size, 3))
        if reye_pose is None:
            reye_pose = z((batch_size, 3))
        if expression is None:
            expression = z((batch_size, NUM_EXPR))
        if betas is None:
            betas = z((batch_size, NUM_BETAS))
        if transl is None:
            transl = z((batch_size, 3))

        if self.use_pca:
            left_hand_pose = left_hand_pose @ self.left_hand_components
            right_hand_pose = right_hand_pose @ self.right_hand_components

        full_pose = jnp.concatenate(
            [global_orient, body_pose, jaw_pose, leye_pose, reye_pose,
             left_hand_pose, right_hand_pose], axis=1) + self.pose_mean[None]
        shape_comp = jnp.concatenate([betas, expression], axis=1)       # (B, L)

        B = batch_size
        V = self.num_verts
        RP = _round_up(3 * B, 8)                                        # padded row count

        # ---- glue: rest joints (folded regression), rotations, kinematic chain ----
        joints_rest = (self.j_template[None]
                       + jnp.einsum('bl,jkl->bjk', shape_comp, self.j_shapedirs))  # (B, J, 3)
        rot_mats = batch_rodrigues(full_pose.reshape(-1, 3)).reshape(B, NUM_JOINTS, 3, 3)
        pose_feature = (rot_mats[:, 1:] - jnp.eye(3, dtype=dtype)).reshape(B, P_DIM)
        posed_joints, A = batch_rigid_transform(rot_mats, joints_rest, self.parents)

        # ---- fused Pallas kernel: shape blend + pose blend + skinning + apply ----
        sc_stack = _blockdiag_rep3(shape_comp, RP)                          # (3RP, 3L) f32
        pf_stack = _blockdiag_rep3(pose_feature, RP).astype(jnp.bfloat16)   # (3RP, 3P) bf16
        a_stack = _a_stack(A, RP, B, J_PAD)                                 # (4RP, 64)  f32
        tr_rows = jnp.pad(transl.reshape(3 * B, 1), ((0, RP - 3 * B), (0, 0)))
        verts_rows = lbs_fused(sc_stack, self.sdirs_blk, self.vt_blk, pf_stack,
                               self.pdirs_blk, a_stack, self.wt_blk, tr_rows)  # (RP, Vp)

        vertices = jnp.transpose(verts_rows[:3 * B, :V].reshape(B, 3, V), (0, 2, 1))  # (B, V, 3)
        joints = posed_joints + transl[:, None, :]
        return {'vertices': vertices, 'joints': joints,
                'full_pose': full_pose, 'betas': betas}


# ---------------- pure-JAX reference (for numerical verification) -----------
def forward_reference(m, betas, global_orient, transl, body_pose, left_hand_pose,
                      right_hand_pose, expression, jaw_pose, leye_pose, reye_pose):
    B = betas.shape[0]
    lh = left_hand_pose @ m.left_hand_components
    rh = right_hand_pose @ m.right_hand_components
    full_pose = jnp.concatenate([global_orient, body_pose, jaw_pose, leye_pose,
                                 reye_pose, lh, rh], axis=1) + m.pose_mean[None]
    shape_comp = jnp.concatenate([betas, expression], axis=1)
    v_shaped = m.v_template[None] + jnp.einsum('bl,vkl->bvk', shape_comp, m.shapedirs)
    J_rest = jnp.einsum('jv,bvk->bjk', m.J_regressor, v_shaped)
    rot_mats = batch_rodrigues(full_pose.reshape(-1, 3)).reshape(B, NUM_JOINTS, 3, 3)
    pose_feature = (rot_mats[:, 1:] - jnp.eye(3, dtype=jnp.float32)).reshape(B, P_DIM)
    v_posed = v_shaped + jnp.einsum('bp,pvk->bvk', pose_feature, m.posedirs)
    posed_joints, A = batch_rigid_transform(rot_mats, J_rest, m.parents)
    T = jnp.einsum('vj,bjrc->bvrc', m.lbs_weights, A)
    v_h = jnp.concatenate([v_posed, jnp.ones((B, v_posed.shape[1], 1), jnp.float32)], axis=-1)
    verts = jnp.einsum('bvrc,bvc->bvr', T, v_h)[..., :3] + transl[:, None, :]
    joints = posed_joints + transl[:, None, :]
    return verts, joints


# ============================ main ===========================================
if __name__ == "__main__":
    key = jax.random.PRNGKey(0)
    kparam, kdata = jax.random.split(key)
    model = BodyModelSMPLXPallas(kparam)

    B = 2
    ks = jax.random.split(kdata, 10)
    betas = 0.5 * jax.random.normal(ks[0], (B, NUM_BETAS), jnp.float32)
    global_orient = 0.3 * jax.random.normal(ks[1], (B, 3), jnp.float32)
    body_pose = 0.2 * jax.random.normal(ks[2], (B, 3 * NUM_BODY_JOINTS), jnp.float32)
    transl = 0.1 * jax.random.normal(ks[3], (B, 3), jnp.float32)
    left_hand_pose = 0.2 * jax.random.normal(ks[4], (B, NUM_PCA), jnp.float32)
    right_hand_pose = 0.2 * jax.random.normal(ks[5], (B, NUM_PCA), jnp.float32)
    expression = 0.5 * jax.random.normal(ks[6], (B, NUM_EXPR), jnp.float32)
    jaw_pose = 0.1 * jax.random.normal(ks[7], (B, 3), jnp.float32)
    leye_pose = 0.05 * jax.random.normal(ks[8], (B, 3), jnp.float32)
    reye_pose = 0.05 * jax.random.normal(ks[9], (B, 3), jnp.float32)

    fwd = jax.jit(lambda *a: model.forward(
        betas=a[0], global_orient=a[1], transl=a[2], body_pose=a[3],
        left_hand_pose=a[4], right_hand_pose=a[5], expression=a[6],
        jaw_pose=a[7], leye_pose=a[8], reye_pose=a[9]))
    out = fwd(betas, global_orient, transl, body_pose, left_hand_pose,
              right_hand_pose, expression, jaw_pose, leye_pose, reye_pose)
    vertices = jax.block_until_ready(out['vertices'])
    joints = jax.block_until_ready(out['joints'])

    assert vertices.shape == (B, NUM_VERTS, 3)
    assert joints.shape == (B, NUM_JOINTS, 3)

    ref_v, ref_j = forward_reference(model, betas, global_orient, transl, body_pose,
                                     left_hand_pose, right_hand_pose, expression,
                                     jaw_pose, leye_pose, reye_pose)
    # bf16 posedirs/pose_feature introduce ~1e-5-level error; well within 1e-3.
    assert jnp.allclose(vertices, ref_v, atol=1e-3, rtol=1e-3)
    assert jnp.allclose(joints, ref_j, atol=1e-3, rtol=1e-3)

    print("KERNEL_OK")
</pallas_src>

<mosaic_0001>
module attributes {stable_mosaic.version = 11 : i64} {
  func.func @_lbs_fused_kernel(%arg0: i32, %arg1: memref<24x60xf32, #tpu.memory_space<vmem>>, %arg2: memref<1x60x128xf32, #tpu.memory_space<vmem>>, %arg3: memref<1x3x128xf32, #tpu.memory_space<vmem>>, %arg4: memref<24x1458xbf16, #tpu.memory_space<vmem>>, %arg5: memref<1x1458x128xbf16, #tpu.memory_space<vmem>>, %arg6: memref<32x64xf32, #tpu.memory_space<vmem>>, %arg7: memref<1x64x128xf32, #tpu.memory_space<vmem>>, %arg8: memref<8x1xf32, #tpu.memory_space<vmem>>, %arg9: memref<8x128xf32, #tpu.memory_space<vmem>>) attributes {dimension_semantics = [#tpu.dimension_semantics<parallel>], iteration_bounds = array<i64: 2>, scalar_prefetch = 0 : i64, scratch_operands = 0 : i64, tpu.core_type = #tpu.core_type<tc>, window_params = [{pipeline_mode = #tpu.pipeline_mode<synchronous>, transform_indices = @transform_0, window_bounds = array<i64: 24, 60>}, {transform_indices = @transform_1, window_bounds = array<i64: 1, 60, 128>}, {transform_indices = @transform_2, window_bounds = array<i64: 1, 3, 128>}, {pipeline_mode = #tpu.pipeline_mode<synchronous>, transform_indices = @transform_3, window_bounds = array<i64: 24, 1458>}, {transform_indices = @transform_4, window_bounds = array<i64: 1, 1458, 128>}, {pipeline_mode = #tpu.pipeline_mode<synchronous>, transform_indices = @transform_5, window_bounds = array<i64: 32, 64>}, {transform_indices = @transform_6, window_bounds = array<i64: 1, 64, 128>}, {pipeline_mode = #tpu.pipeline_mode<synchronous>, transform_indices = @transform_7, window_bounds = array<i64: 8, 1>}, {transform_indices = @transform_8, window_bounds = array<i64: 8, 128>}]} {
    %c0 = arith.constant 0 : index
    %c0_0 = arith.constant 0 : index
    %0 = vector.load %arg1[%c0, %c0_0] : memref<24x60xf32, #tpu.memory_space<vmem>>, vector<24x60xf32>
    %c0_1 = arith.constant 0 : index
    %c0_2 = arith.constant 0 : index
    %c0_3 = arith.constant 0 : index
    %1 = vector.load %arg2[%c0_1, %c0_2, %c0_3] : memref<1x60x128xf32, #tpu.memory_space<vmem>>, vector<1x60x128xf32>
    %2 = vector.shape_cast %1 : vector<1x60x128xf32> to vector<60x128xf32>
    %cst = arith.constant dense<0.000000e+00> : vector<24x128xf32>
    %3 = tpu.matmul %0, %2, %cst {dimension_numbers = #tpu.dot_dimension_numbers<[1], [0], [0], [1], [0, 0, 1, 1], [], []>} : vector<24x60xf32>, vector<60x128xf32>, vector<24x128xf32> -> vector<24x128xf32>
    %c0_4 = arith.constant 0 : index
    %c0_5 = arith.constant 0 : index
    %4 = vector.load %arg4[%c0_4, %c0_5] : memref<24x1458xbf16, #tpu.memory_space<vmem>>, vector<24x1458xbf16>
    %c0_6 = arith.constant 0 : index
    %c0_7 = arith.constant 0 : index
    %c0_8 = arith.constant 0 : index
    %5 = vector.load %arg5[%c0_6, %c0_7, %c0_8] : memref<1x1458x128xbf16, #tpu.memory_space<vmem>>, vector<1x1458x128xbf16>
    %6 = vector.shape_cast %5 : vector<1x1458x128xbf16> to vector<1458x128xbf16>
    %cst_9 = arith.constant dense<0.000000e+00> : vector<24x128xf32>
    %7 = tpu.matmul %4, %6, %cst_9 {dimension_numbers = #tpu.dot_dimension_numbers<[1], [0], [0], [1], [0, 0, 1, 1], [], []>} : vector<24x1458xbf16>, vector<1458x128xbf16>, vector<24x128xf32> -> vector<24x128xf32>
    %c0_10 = arith.constant 0 : index
    %c0_11 = arith.constant 0 : index
    %8 = vector.load %arg6[%c0_10, %c0_11] : memref<32x64xf32, #tpu.memory_space<vmem>>, vector<32x64xf32>
    %c0_12 = arith.constant 0 : index
    %c0_13 = arith.constant 0 : index
    %c0_14 = arith.constant 0 : index
    %9 = vector.load %arg7[%c0_12, %c0_13, %c0_14] : memref<1x64x128xf32, #tpu.memory_space<vmem>>, vector<1x64x128xf32>
    %10 = vector.shape_cast %9 : vector<1x64x128xf32> to vector<64x128xf32>
    %cst_15 = arith.constant dense<0.000000e+00> : vector<32x128xf32>
    %11 = tpu.matmul %8, %10, %cst_15 {dimension_numbers = #tpu.dot_dimension_numbers<[1], [0], [0], [1], [0, 0, 1, 1], [], []>} : vector<32x64xf32>, vector<64x128xf32>, vector<32x128xf32> -> vector<32x128xf32>
    %c0_16 = arith.constant 0 : index
    %c0_17 = arith.constant 0 : index
    %c0_18 = arith.constant 0 : index
    %12 = vector.load %arg3[%c0_16, %c0_17, %c0_18] : memref<1x3x128xf32, #tpu.memory_space<vmem>>, vector<1x3x128xf32>
    %13 = vector.shape_cast %12 : vector<1x3x128xf32> to vector<3x128xf32>
    %14 = vector.extract_strided_slice %11 {offsets = [24, 0], sizes = [8, 128], strides = [1, 1]} : vector<32x128xf32> to vector<8x128xf32>
    %c0_19 = arith.constant 0 : index
    %c0_20 = arith.constant 0 : index
    %15 = vector.load %arg8[%c0_19, %c0_20] : memref<8x1xf32, #tpu.memory_space<vmem>>, vector<8x1xf32>
    %16 = vector.broadcast %15 : vector<8x1xf32> to vector<8x128xf32>
    %17 = arith.addf %14, %16 : vector<8x128xf32>
    %18 = vector.extract_strided_slice %13 {offsets = [0, 0], sizes = [1, 128], strides = [1, 1]} : vector<3x128xf32> to vector<1x128xf32>
    %19 = vector.extract_strided_slice %3 {offsets = [0, 0], sizes = [8, 128], strides = [1, 1]} : vector<24x128xf32> to vector<8x128xf32>
    %20 = vector.broadcast %18 : vector<1x128xf32> to vector<8x128xf32>
    %21 = arith.addf %20, %19 : vector<8x128xf32>
    %22 = vector.extract_strided_slice %7 {offsets = [0, 0], sizes = [8, 128], strides = [1, 1]} : vector<24x128xf32> to vector<8x128xf32>
    %23 = arith.addf %21, %22 : vector<8x128xf32>
    %24 = vector.extract_strided_slice %11 {offsets = [0, 0], sizes = [8, 128], strides = [1, 1]} : vector<32x128xf32> to vector<8x128xf32>
    %25 = arith.mulf %24, %23 : vector<8x128xf32>
    %26 = arith.addf %17, %25 : vector<8x128xf32>
    %27 = vector.extract_strided_slice %13 {offsets = [1, 0], sizes = [1, 128], strides = [1, 1]} : vector<3x128xf32> to vector<1x128xf32>
    %28 = vector.extract_strided_slice %3 {offsets = [8, 0], sizes = [8, 128], strides = [1, 1]} : vector<24x128xf32> to vector<8x128xf32>
    %29 = vector.broadcast %27 : vector<1x128xf32> to vector<8x128xf32>
    %30 = arith.addf %29, %28 : vector<8x128xf32>
    %31 = vector.extract_strided_slice %7 {offsets = [8, 0], sizes = [8, 128], strides = [1, 1]} : vector<24x128xf32> to vector<8x128xf32>
    %32 = arith.addf %30, %31 : vector<8x128xf32>
    %33 = vector.extract_strided_slice %11 {offsets = [8, 0], sizes = [8, 128], strides = [1, 1]} : vector<32x128xf32> to vector<8x128xf32>
    %34 = arith.mulf %33, %32 : vector<8x128xf32>
    %35 = arith.addf %26, %34 : vector<8x128xf32>
    %36 = vector.extract_strided_slice %13 {offsets = [2, 0], sizes = [1, 128], strides = [1, 1]} : vector<3x128xf32> to vector<1x128xf32>
    %37 = vector.extract_strided_slice %3 {offsets = [16, 0], sizes = [8, 128], strides = [1, 1]} : vector<24x128xf32> to vector<8x128xf32>
    %38 = vector.broadcast %36 : vector<1x128xf32> to vector<8x128xf32>
    %39 = arith.addf %38, %37 : vector<8x128xf32>
    %40 = vector.extract_strided_slice %7 {offsets = [16, 0], sizes = [8, 128], strides = [1, 1]} : vector<24x128xf32> to vector<8x128xf32>
    %41 = arith.addf %39, %40 : vector<8x128xf32>
    %42 = vector.extract_strided_slice %11 {offsets = [16, 0], sizes = [8, 128], strides = [1, 1]} : vector<32x128xf32> to vector<8x128xf32>
    %43 = arith.mulf %42, %41 : vector<8x128xf32>
    %44 = arith.addf %35, %43 : vector<8x128xf32>
    %c0_21 = arith.constant 0 : index
    %c0_22 = arith.constant 0 : index
    %45 = vector.load %arg9[%c0_21, %c0_22] : memref<8x128xf32, #tpu.memory_space<vmem>>, vector<8x128xf32>
    tpu.vector_store %arg9[%c0_21, %c0_22], %44 {strides = array<i32>} : memref<8x128xf32, #tpu.memory_space<vmem>>, vector<8x128xf32>,
    return
  }
  func.func @transform_0(%arg0: i32) -> (i32, i32) {
    %c0_i32 = arith.constant 0 : i32
    %c0_i32_0 = arith.constant 0 : i32
    %c0_i32_1 = arith.constant 0 : i32
    return %c0_i32, %c0_i32_0 : i32, i32
  }
  func.func @transform_1(%arg0: i32) -> (i32, i32, i32) {
    %c0_i32 = arith.constant 0 : i32
    %c0_i32_0 = arith.constant 0 : i32
    %c0_i32_1 = arith.constant 0 : i32
    return %arg0, %c0_i32, %c0_i32_0 : i32, i32, i32
  }
  func.func @transform_2(%arg0: i32) -> (i32, i32, i32) {
    %c0_i32 = arith.constant 0 : i32
    %c0_i32_0 = arith.constant 0 : i32
    %c0_i32_1 = arith.constant 0 : i32
    return %arg0, %c0_i32, %c0_i32_0 : i32, i32, i32
  }
  func.func @transform_3(%arg0: i32) -> (i32, i32) {
    %c0_i32 = arith.constant 0 : i32
    %c0_i32_0 = arith.constant 0 : i32
    %c0_i32_1 = arith.constant 0 : i32
    return %c0_i32, %c0_i32_0 : i32, i32
  }
  func.func @transform_4(%arg0: i32) -> (i32, i32, i32) {
    %c0_i32 = arith.constant 0 : i32
    %c0_i32_0 = arith.constant 0 : i32
    %c0_i32_1 = arith.constant 0 : i32
    return %arg0, %c0_i32, %c0_i32_0 : i32, i32, i32
  }
  func.func @transform_5(%arg0: i32) -> (i32, i32) {
    %c0_i32 = arith.constant 0 : i32
    %c0_i32_0 = arith.constant 0 : i32
    %c0_i32_1 = arith.constant 0 : i32
    return %c0_i32, %c0_i32_0 : i32, i32
  }
  func.func @transform_6(%arg0: i32) -> (i32, i32, i32) {
    %c0_i32 = arith.constant 0 : i32
    %c0_i32_0 = arith.constant 0 : i32
    %c0_i32_1 = arith.constant 0 : i32
    return %arg0, %c0_i32, %c0_i32_0 : i32, i32, i32
  }
  func.func @transform_7(%arg0: i32) -> (i32, i32) {
    %c0_i32 = arith.constant 0 : i32
    %c0_i32_0 = arith.constant 0 : i32
    %c0_i32_1 = arith.constant 0 : i32
    return %c0_i32, %c0_i32_0 : i32, i32
  }
  func.func @transform_8(%arg0: i32) -> (i32, i32) {
    %c0_i32 = arith.constant 0 : i32
    %c0_i32_0 = arith.constant 0 : i32
    return %c0_i32, %arg0 : i32, i32
  }
}

</mosaic_0001>

<bundles_post_ra>
// kernel: _lambda_.1
= control target key start
LH: loop header
LB: loop body
LE: loop exit
PB: predicated region body
PF: predicated region fallthrough
CT: control target
= control target key end

     0   :  { %s2271_s27 = smov 0   ;;  %s2549_s0 = inlined_call_operand.vmem [shape: f32[24,60], index: 0, kind: input, shape index: {}]   ;;  %s2550_s1 = inlined_call_operand.vmem [shape: f32[2,60,128], index: 1, kind: input, shape index: {}]   ;;  %s2551_s2 = inlined_call_operand.vmem [shape: f32[2,3,128], index: 2, kind: input, shape index: {}]   ;;  %s2552_s3 = inlined_call_operand.vmem [shape: bf16[24,1458], index: 3, kind: input, shape index: {}]   ;;  %s2553_s4 = inlined_call_operand.vmem [shape: bf16[2,1458,128], index: 4, kind: input, shape index: {}]   ;;  %s2554_s5 = inlined_call_operand.vmem [shape: f32[32,64], index: 5, kind: input, shape index: {}]   ;;  %s2555_s6 = inlined_call_operand.vmem [shape: f32[2,64,128], index: 6, kind: input, shape index: {}]   ;;  %s2556_s7 = inlined_call_operand.vmem [shape: f32[8,1], index: 7, kind: input, shape index: {}]   ;;  %s2557_s8 = inlined_call_operand.vmem [shape: f32[8,256], index: 8, kind: output, shape index: {}]  }
   0x1 LB: > { %s1657_s28 = sadd.s32 4294967295, %s2223_s27   ;;  %p1661_p0 = scmp.ge.s32.totalorder %s2223_s27, 1  ;;  %s2223_s27 = sphi %s2271_s27, %s18_s27  }
   0x2   : > { %p291_p1 = scmp.lt.s32.totalorder %s2223_s27, 3 }
   0x4   : > { %p292_p2 = pnand %p1661_p0, %p291_p1 }
   0x5   : > { %p338_p3 = scmp.lt.s32.totalorder (!%p292_p2), %s1657_s28, 1 }
   0x6   : > { %295 = sbr.rel (%p292_p2) target bundleno = 293 (0x125), region = 52 }
   0xb   : > { %s2559_s28 = smov (!%p338_p3, %s1657_s28), 1  ;;  %vm383_vm0 = vcmask 1043456   ;;  %v362_v21 = vld [vmem:[%s2549_s0] sm:$0xff]  ;;  %vm373_vm1 = vcmask 490496   ;;  %v363_v30 = vld [vmem:[%s2549_s0 + $0x8] sm:$0xff]  ;;  %v364_v53 = vld [vmem:[%s2549_s0 + $0x10] sm:$0xff] }
   0xc   : > { %s2093_s29 = sshll.u32 %s2559_s28, 6  ;;  %s2206_s30 = smul.u32 732, %s2559_s28  ;;  %v1675_v38 = vld [vmem:[%s2552_s3] sm:$0xf]  ;;  %v2101_v39 = vld [vmem:[%s2552_s3 + $0x2c] sm:$0xf0] }
   0xd   : > { %s2288_s11 = scalar_lea.vmem %s2550_s1, %s2093_s29  ;;  %v2095_v41 = vld [vmem:[%s2552_s3 + $0x4] sm:$0xf]  ;;  %v1677_v42 = vld [vmem:[%s2552_s3 + $0x30] sm:$0xf0]  ;;  %v1683_v44 = vld [vmem:[%s2552_s3 + $0x8] sm:$0xf]  ;;  %v1676_v46 = vor.u32 %v2101_v39, %v1675_v38 }
   0xe   : > { %s2293_s14 = scalar_lea.vmem %s2553_s4, %s2206_s30  ;;  %v372_v0 = vld [vmem:[%s2288_s11 + $0x38] sm:$0xf]  ;;  %v371_v1 = vld [vmem:[%s2288_s11 + $0x30] sm:$0xff]  ;;  %v370_v5 = vld [vmem:[%s2288_s11 + $0x28] sm:$0xff]  ;;  %v1680_v48 = vor.u32 %v2095_v41, %v1677_v42  ;;  %vm1270_vm2 = vcmask 1040384   ;;  %s2468_s30 = scalar_lea.vmem %s2555_s6, %s2093_s29  ;;  %vm1263_vm3 = vcmask 408576  }
   0xf   : > { %1669 = vmatpush.msk.msra.mxu0 %vm383_vm0, %v372_v0  ;;  %v2114_v2 = vld [vmem:[%s2293_s14 + $0x38] sm:$0xff]  ;;  %v2113_v6 = vld [vmem:[%s2293_s14 + $0x30] sm:$0xff]  ;;  %v369_v7 = vld [vmem:[%s2288_s11 + $0x20] sm:$0xff]  ;;  %vm1502_vm4 = vcmask 523264   ;;  %s1664_s18 = sshll.u32 %s2559_s28, 2  ;;  %s1668_s22 = sshll.u32 %s2559_s28, 3 }
  0x10   : > { %v2122_v3 = vld [vmem:[%s2293_s14 + $0x78] sm:$0xff]  ;;  %1274 = vmatpush.bf16.msra.mxu1 %v2114_v2  ;;  %v2121_v8 = vld [vmem:[%s2293_s14 + $0x70] sm:$0xff]  ;;  %v2112_v11 = vld [vmem:[%s2293_s14 + $0x28] sm:$0xff]  ;;  %s346_s21 = scalar_lea.vmem %s2551_s2, %s1664_s18  ;;  %s360_s25 = scalar_lea.vmem %s2557_s8, %s1668_s22 }
  0x11   : > { %v2130_v4 = vld [vmem:[%s2293_s14 + $0xb8] sm:$0xff]  ;;  %396 = vmatpush.msra.mxu0 %v371_v1  ;;  %1292 = vmatpush.bf16.msra.mxu2 %v2122_v3  ;;  %v2129_v9 = vld [vmem:[%s2293_s14 + $0xb0] sm:$0xff]  ;;  %v2120_v13 = vld [vmem:[%s2293_s14 + $0x68] sm:$0xff] }
  0x12   : > { %1310 = vmatpush.bf16.msra.mxu3 %v2130_v4  ;;  %v368_v10 = vld [vmem:[%s2288_s11 + $0x18] sm:$0xff]  ;;  %v367_v12 = vld [vmem:[%s2288_s11 + $0x10] sm:$0xff]  ;;  %v2128_v14 = vld [vmem:[%s2293_s14 + $0xa8] sm:$0xff] }
  0x13   : > { %397 = vmatpush.msra.mxu0 %v370_v5  ;;  %v366_v15 = vld [vmem:[%s2288_s11 + $0x8] sm:$0xff]  ;;  %v2111_v16 = vld [vmem:[%s2293_s14 + $0x20] sm:$0xff]  ;;  %v2138_v19 = vld [vmem:[%s2293_s14 + $0xf8] sm:$0xff] }
  0x14   : > { %1275 = vmatpush.bf16.msra.mxu1 %v2113_v6  ;;  %v365_v17 = vld [vmem:[%s2288_s11] sm:$0xff]  ;;  %v2110_v22 = vld [vmem:[%s2293_s14 + $0x18] sm:$0xff]  ;;  %v2137_v24 = vld [vmem:[%s2293_s14 + $0xf0] sm:$0xff] }
  0x15   : > { %398 = vmatpush.msra.mxu0 %v369_v7  ;;  %1293 = vmatpush.bf16.msra.mxu2 %v2121_v8  ;;  %v2119_v18 = vld [vmem:[%s2293_s14 + $0x60] sm:$0xff]  ;;  %v2118_v23 = vld [vmem:[%s2293_s14 + $0x58] sm:$0xff]  ;;  %v2109_v26 = vld [vmem:[%s2293_s14 + $0x10] sm:$0xff] }
  0x16   : > { %1311 = vmatpush.bf16.msra.mxu3 %v2129_v9  ;;  %v2127_v20 = vld [vmem:[%s2293_s14 + $0xa0] sm:$0xff]  ;;  %v2126_v25 = vld [vmem:[%s2293_s14 + $0x98] sm:$0xff]  ;;  %v2117_v27 = vld [vmem:[%s2293_s14 + $0x50] sm:$0xff] }
  0x17   : > { %399 = vmatpush.msra.mxu0 %v368_v10  ;;  %v2136_v28 = vld [vmem:[%s2293_s14 + $0xe8] sm:$0xff]  ;;  %v2125_v29 = vld [vmem:[%s2293_s14 + $0x90] sm:$0xff]  ;;  %v2135_v33 = vld [vmem:[%s2293_s14 + $0xe0] sm:$0xff] }
  0x18   : > { %1276 = vmatpush.bf16.msra.mxu1 %v2112_v11  ;;  %v2108_v31 = vld [vmem:[%s2293_s14 + $0x8] sm:$0xff]  ;;  %v2107_v35 = vld [vmem:[%s2293_s14] sm:$0xff]  ;;  %v2134_v37 = vld [vmem:[%s2293_s14 + $0xd8] sm:$0xff] }
  0x19   : > { %400 = vmatpush.msra.mxu0 %v367_v12  ;;  %1294 = vmatpush.bf16.msra.mxu2 %v2120_v13  ;;  %v2116_v32 = vld [vmem:[%s2293_s14 + $0x48] sm:$0xff]  ;;  %v2115_v36 = vld [vmem:[%s2293_s14 + $0x40] sm:$0xff]  ;;  %v2154_v43 = vld [vmem:[%s2293_s14 + $0x178] sm:$0xff] }
  0x1a   : > { %1312 = vmatpush.bf16.msra.mxu3 %v2128_v14  ;;  %v2124_v34 = vld [vmem:[%s2293_s14 + $0x88] sm:$0xff]  ;;  %v2123_v40 = vld [vmem:[%s2293_s14 + $0x80] sm:$0xff]  ;;  %v2102_v45 = vld [vmem:[%s2552_s3 + $0x34] sm:$0xf0] }
  0x1b   : > { %401 = vmatpush.msra.mxu0 %v366_v15  ;;  %v2162_v47 = vld [vmem:[%s2293_s14 + $0x1b8] sm:$0xff]  ;;  %v2133_v50 = vld [vmem:[%s2293_s14 + $0xd0] sm:$0xff]  ;;  %v1684_v51 = vor.u32 %v2102_v45, %v1683_v44  ;;  %v2132_v56 = vld [vmem:[%s2293_s14 + $0xc8] sm:$0xff] }
  0x1c   : > { %1277 = vmatpush.bf16.msra.mxu1 %v2111_v16  ;;  %v2146_v49 = vld [vmem:[%s2293_s14 + $0x138] sm:$0xff]  ;;  %v2153_v52 = vld [vmem:[%s2293_s14 + $0x170] sm:$0xff]  ;;  %v2152_v57 = vld [vmem:[%s2293_s14 + $0x168] sm:$0xff] }
  0x1d   : > { %402 = vmatpush.msra.mxu0 %v365_v17  ;;  %1295 = vmatpush.bf16.msra.mxu2 %v2119_v18  ;;  %v2161_v54 = vld [vmem:[%s2293_s14 + $0x1b0] sm:$0xff]  ;;  %v2160_v58 = vld [vmem:[%s2293_s14 + $0x1a8] sm:$0xff]  ;;  %v425_v60 = vld [vmem:[%s2552_s3 + $0x60] sm:$0xff] }
  0x1e   : > { %1313 = vmatpush.bf16.msra.mxu3 %v2127_v20  ;;  %1670 = vmatmul.msk.f32.vlgmr.msra.gmra.mxu0 %vm373_vm1, %v362_v21  ;;  %v2145_v55 = vld [vmem:[%s2293_s14 + $0x130] sm:$0xff]  ;;  %v2144_v59 = vld [vmem:[%s2293_s14 + $0x128] sm:$0xff]  ;;  %v2131_v61 = vld [vmem:[%s2293_s14 + $0xc0] sm:$0xff]  ;;  %v656_v4 = vunpack.c.l.b16 %v425_v60  ;;  %v657_v7 = vunpack.c.h.b16 %v425_v60 }
  0x1f   : > { %1328 = vmatpush.bf16.msrb.mxu0 %v2138_v19  ;;  %v2096_v62 = vld [vmem:[%s2552_s3 + $0xc] sm:$0xf]  ;;  %v1685_v63 = vld [vmem:[%s2552_s3 + $0x38] sm:$0xf0]  ;;  %v2151_v0 = vld [vmem:[%s2293_s14 + $0x160] sm:$0xff] }
  0x20   : > { %1278 = vmatpush.bf16.msra.mxu1 %v2110_v22  ;;  %v2170_v1 = vld [vmem:[%s2293_s14 + $0x1f8] sm:$0xff]  ;;  %v426_v2 = vld [vmem:[%s2552_s3 + $0x68] sm:$0xff]  ;;  %v2159_v3 = vld [vmem:[%s2293_s14 + $0x1a0] sm:$0xff]  ;;  %v1688_v5 = vor.u32 %v2096_v62, %v1685_v63  ;;  %v680_v11 = vpack.c.b16 %v656_v4, %v656_v4  ;;  %v681_v13 = vpack.c.b16 %v657_v7, %v657_v7 }
  0x21   : > { %1296 = vmatpush.bf16.msra.mxu2 %v2118_v23  ;;  %v2143_v6 = vld [vmem:[%s2293_s14 + $0x120] sm:$0xff]  ;;  %v658_v8 = vunpack.c.l.b16 %v426_v2  ;;  %v2150_v9 = vld [vmem:[%s2293_s14 + $0x158] sm:$0xff]  ;;  %v2169_v10 = vld [vmem:[%s2293_s14 + $0x1f0] sm:$0xff] }
  0x22   : > { %1314 = vmatpush.bf16.msra.mxu3 %v2126_v25  ;;  %v2158_v12 = vld [vmem:[%s2293_s14 + $0x198] sm:$0xff]  ;;  %v2149_v16 = vld [vmem:[%s2293_s14 + $0x150] sm:$0xff]  ;;  %v2168_v17 = vld [vmem:[%s2293_s14 + $0x1e8] sm:$0xff] }
  0x23   : > { %1329 = vmatpush.bf16.msrb.mxu0 %v2137_v24  ;;  %v2142_v14 = vld [vmem:[%s2293_s14 + $0x118] sm:$0xff]  ;;  %v682_v15 = vpack.c.b16 %v658_v8, %v658_v8  ;;  %v2157_v18 = vld [vmem:[%s2293_s14 + $0x190] sm:$0xff]  ;;  %v2148_v20 = vld [vmem:[%s2293_s14 + $0x148] sm:$0xff]  ;;  %v659_v24 = vunpack.c.h.b16 %v426_v2 }
  0x24   : > { %1279 = vmatpush.bf16.msra.mxu1 %v2109_v26  ;;  %v2141_v19 = vld [vmem:[%s2293_s14 + $0x110] sm:$0xff]  ;;  %v2167_v21 = vld [vmem:[%s2293_s14 + $0x1e0] sm:$0xff]  ;;  %v2156_v22 = vld [vmem:[%s2293_s14 + $0x188] sm:$0xff] }
  0x25   : > { %1297 = vmatpush.bf16.msra.mxu2 %v2117_v27  ;;  %v2140_v23 = vld [vmem:[%s2293_s14 + $0x108] sm:$0xff]  ;;  %v2147_v25 = vld [vmem:[%s2293_s14 + $0x140] sm:$0xff]  ;;  %v2166_v27 = vld [vmem:[%s2293_s14 + $0x1d8] sm:$0xff] }
  0x26   : > { %1315 = vmatpush.bf16.msra.mxu3 %v2125_v29  ;;  %1671 = vmatmul.msk.f32.gmra.mxu0 %vm373_vm1, %v363_v30  ;;  %v2139_v26 = vld [vmem:[%s2293_s14 + $0x100] sm:$0xff]  ;;  %v1691_v29 = vld [vmem:[%s2552_s3 + $0x10] sm:$0xf]  ;;  %v2186_v30 = vld [vmem:[%s2293_s14 + $0x278] sm:$0xff] }
  0x27   : > { %1330 = vmatpush.bf16.msrb.mxu0 %v2136_v28  ;;  %v2155_v28 = vld [vmem:[%s2293_s14 + $0x180] sm:$0xff]  ;;  %v2165_v38 = vld [vmem:[%s2293_s14 + $0x1d0] sm:$0xff]  ;;  %v1699_v39 = vld [vmem:[%s2552_s3 + $0x18] sm:$0xf] }
  0x28   : > { %1280 = vmatpush.bf16.msra.mxu1 %v2108_v31  ;;  %v683_v31 = vpack.c.b16 %v659_v24, %v659_v24  ;;  %v2185_v42 = vld [vmem:[%s2293_s14 + $0x270] sm:$0xff]  ;;  %v2191_v60 = vld [vmem:[%s2293_s14 + $0x2a0] sm:$0xff]  ;;  %v2182_v63 = vld [vmem:[%s2293_s14 + $0x258] sm:$0xff] }
  0x29   : > { %1298 = vmatpush.bf16.msra.mxu2 %v2116_v32  ;;  %v2103_v32 = vld [vmem:[%s2552_s3 + $0x3c] sm:$0xf0]  ;;  %v2181_v7 = vld [vmem:[%s2293_s14 + $0x250] sm:$0xff] }
  0x2a   : > { %1316 = vmatpush.bf16.msra.mxu3 %v2124_v34  ;;  %v1693_v34 = vld [vmem:[%s2552_s3 + $0x40] sm:$0xf0]  ;;  %v1692_v41 = vor.u32 %v2103_v32, %v1691_v29  ;;  %v1707_v24 = vld [vmem:[%s2552_s3 + $0x20] sm:$0xf]  ;;  %v1715_v29 = vld [vmem:[%s2552_s3 + $0x28] sm:$0xf] }
  0x2b   : > { %1331 = vmatpush.bf16.msrb.mxu0 %v2135_v33  ;;  %v2097_v33 = vld [vmem:[%s2552_s3 + $0x14] sm:$0xf]  ;;  %v1498_v32 = vld [vmem:[%s2468_s30 + $0x20] sm:$0xff] }
  0x2c   : > { %1281 = vmatpush.bf16.msra.mxu1 %v2107_v35  ;;  %v2178_v35 = vld [vmem:[%s2293_s14 + $0x238] sm:$0xff] }
  0x2d   : > { %1299 = vmatpush.bf16.msra.mxu2 %v2115_v36  ;;  %v2194_v36 = vld [vmem:[%s2293_s14 + $0x2b8] sm:$0xff] }
  0x2e   : > { %1317 = vmatpush.bf16.msra.mxu3 %v2123_v40  ;;  %1672 = vmatmul.msk.f32.gmra.mxu0 %vm373_vm1, %v364_v53  ;;  %v2104_v40 = vld [vmem:[%s2552_s3 + $0x44] sm:$0xf0] }
  0x2f   : > { %1332 = vmatpush.bf16.msrb.mxu0 %v2134_v37  ;;  %1282 = vmatmul.bf16.vlgmr.msra.gmra.mxu1 %v1676_v46  ;;  %v613_v37 = vld [vmem:[%s2293_s14 + $0x2d8] sm:$0x1]  ;;  %v1700_v45 = vor.u32 %v2104_v40, %v1699_v39  ;;  %v2177_v46 = vld [vmem:[%s2293_s14 + $0x230] sm:$0xff]  ;;  %v2192_v53 = vld [vmem:[%s2293_s14 + $0x2a8] sm:$0xff] }
  0x30   : > { %1300 = vmatmul.bf16.vlgmr.msra.gmra.mxu2 %v1680_v48  ;;  %1346 = vmatpush.bf16.msrb.mxu1 %v2146_v49  ;;  %v1079_v44 = vunpack.c.l.b16 %v613_v37  ;;  %v2193_v48 = vld [vmem:[%s2293_s14 + $0x2b0] sm:$0xff]  ;;  %v2184_v49 = vld [vmem:[%s2293_s14 + $0x268] sm:$0xff]  ;;  %v1494_v39 = vld [vmem:[%s2468_s30] sm:$0xff] }
  0x31   : > { %1364 = vmatpush.bf16.msrb.mxu2 %v2154_v43  ;;  %1318 = vmatmul.bf16.vlgmr.msra.gmra.mxu3 %v1684_v51  ;;  %v1696_v43 = vor.u32 %v2097_v33, %v1693_v34  ;;  %v2176_v51 = vld [vmem:[%s2293_s14 + $0x228] sm:$0xff] }
  0x32   : > { %1382 = vmatpush.bf16.msrb.mxu3 %v2162_v47  ;;  %v2164_v47 = vld [vmem:[%s2293_s14 + $0x1c8] sm:$0xff] }
  0x33   : > { %1333 = vmatpush.bf16.msrb.mxu0 %v2133_v50  ;;  %v1171_v50 = vpack.c.b16 %v1079_v44, %v1079_v44  ;;  %v1495_v37 = vld [vmem:[%s2468_s30 + $0x8] sm:$0xff] }
  0x34   : > { %1347 = vmatpush.bf16.msrb.mxu1 %v2145_v55  ;;  %v427_v55 = vld [vmem:[%s2552_s3 + $0x70] sm:$0xff]  ;;  %v2100_v40 = vld [vmem:[%s2552_s3 + $0x2c] sm:$0xf] }
  0x35   : > { %1365 = vmatpush.bf16.msrb.mxu2 %v2153_v52  ;;  %v2163_v52 = vld [vmem:[%s2293_s14 + $0x1c0] sm:$0xff]  ;;  %v660_v62 = vunpack.c.l.b16 %v427_v55  ;;  %v661_v2 = vunpack.c.h.b16 %v427_v55  ;;  %v1492_v55 = vld [vmem:[%s2554_s5 + $0x10] sm:$0xff] }
  0x36   : > { %1383 = vmatpush.bf16.msrb.mxu3 %v2161_v54  ;;  %v2183_v54 = vld [vmem:[%s2293_s14 + $0x260] sm:$0xff] }
  0x37   : > { %1334 = vmatpush.bf16.msrb.mxu0 %v2132_v56  ;;  %v1272_v56 = vsel %vm1270_vm2, %v1171_v50, 0  ;;  %v685_v8 = vpack.c.b16 %v661_v2, %v661_v2 }
  0x38   : > { %1348 = vmatpush.bf16.msrb.mxu1 %v2144_v59  ;;  %v2175_v59 = vld [vmem:[%s2293_s14 + $0x220] sm:$0xff] }
  0x39   : > { %1366 = vmatpush.bf16.msrb.mxu2 %v2152_v57  ;;  %v2098_v57 = vld [vmem:[%s2552_s3 + $0x1c] sm:$0xf] }
  0x3a   : > { %1384 = vmatpush.bf16.msrb.mxu3 %v2160_v58  ;;  %v1701_v58 = vld [vmem:[%s2552_s3 + $0x48] sm:$0xf0] }
  0x3b   : > { %1335 = vmatpush.bf16.msrb.mxu0 %v2131_v61  ;;  %v428_v61 = vld [vmem:[%s2552_s3 + $0x78] sm:$0xff] }
  0x3c   : > { %1349 = vmatpush.bf16.msrb.mxu1 %v2143_v6  ;;  %v662_v4 = vunpack.c.l.b16 %v428_v61  ;;  %v684_v6 = vpack.c.b16 %v660_v62, %v660_v62 }
  0x3d   : > { %1367 = vmatpush.bf16.msrb.mxu2 %v2151_v0  ;;  %v2197_v0 = vld [vmem:[%s2293_s14 + $0x2d0] sm:$0xff] }
  0x3e   : > { %1385 = vmatpush.bf16.msrb.mxu3 %v2159_v3  ;;  %1336 = vmatmul.bf16.vlgmr.msrb.gmra.mxu0 %v1688_v5  ;;  %v2174_v3 = vld [vmem:[%s2293_s14 + $0x218] sm:$0xff] }
  0x3f   : > { %1400 = vmatpush.bf16.msra.mxu0 %v2170_v1  ;;  %1287 = vmatmul.bf16.gmra.mxu1 %v680_v11  ;;  %v1704_v1 = vor.u32 %v2098_v57, %v1701_v58  ;;  %v2190_v5 = vld [vmem:[%s2293_s14 + $0x298] sm:$0xff]  ;;  %v2173_v11 = vld [vmem:[%s2293_s14 + $0x210] sm:$0xff] }
  0x40   : > { %1305 = vmatmul.bf16.gmra.mxu2 %v681_v13  ;;  %1350 = vmatpush.bf16.msrb.mxu1 %v2142_v14  ;;  %v2180_v13 = vld [vmem:[%s2293_s14 + $0x248] sm:$0xff]  ;;  %v2195_v14 = vld [vmem:[%s2293_s14 + $0x2c0] sm:$0xff]  ;;  %v1493_v57 = vld [vmem:[%s2554_s5 + $0x18] sm:$0xff] }
  0x41   : > { %1368 = vmatpush.bf16.msrb.mxu2 %v2150_v9  ;;  %1323 = vmatmul.bf16.gmra.mxu3 %v682_v15  ;;  %v2196_v9 = vld [vmem:[%s2293_s14 + $0x2c8] sm:$0xff] }
  0x42   : > { %1386 = vmatpush.bf16.msrb.mxu3 %v2158_v12  ;;  %v2189_v12 = vld [vmem:[%s2293_s14 + $0x290] sm:$0xff]  ;;  %v2172_v15 = vld [vmem:[%s2293_s14 + $0x208] sm:$0xff] }
  0x43   : > { %1401 = vmatpush.bf16.msra.mxu0 %v2169_v10  ;;  %v686_v10 = vpack.c.b16 %v662_v4, %v662_v4 }
  0x44   : > { %1351 = vmatpush.bf16.msrb.mxu1 %v2141_v19  ;;  %v2171_v19 = vld [vmem:[%s2293_s14 + $0x200] sm:$0xff] }
  0x45   : > { %1369 = vmatpush.bf16.msrb.mxu2 %v2149_v16  ;;  %v2188_v16 = vld [vmem:[%s2293_s14 + $0x288] sm:$0xff] }
  0x46   : > { %1387 = vmatpush.bf16.msrb.mxu3 %v2157_v18  ;;  %v663_v18 = vunpack.c.h.b16 %v428_v61 }
  0x47   : > { %1402 = vmatpush.bf16.msra.mxu0 %v2168_v17  ;;  %v2179_v17 = vld [vmem:[%s2293_s14 + $0x240] sm:$0xff] }
  0x48   : > { %1352 = vmatpush.bf16.msrb.mxu1 %v2140_v23  ;;  %v687_v23 = vpack.c.b16 %v663_v18, %v663_v18 }
  0x49   : > { %1370 = vmatpush.bf16.msrb.mxu2 %v2148_v20  ;;  %v1501_v20 = vld [vmem:[%s2468_s30 + $0x38] sm:$0xff] }
  0x4a   : > { %1388 = vmatpush.bf16.msrb.mxu3 %v2156_v22  ;;  %v1500_v22 = vld [vmem:[%s2468_s30 + $0x30] sm:$0xff] }
  0x4b   : > { %1403 = vmatpush.bf16.msra.mxu0 %v2167_v21  ;;  %v2187_v21 = vld [vmem:[%s2293_s14 + $0x280] sm:$0xff] }
  0x4c   : > { %1353 = vmatpush.bf16.msrb.mxu1 %v2139_v26  ;;  %v2099_v26 = vld [vmem:[%s2552_s3 + $0x24] sm:$0xf] }
  0x4d   : > { %1371 = vmatpush.bf16.msrb.mxu2 %v2147_v25  ;;  %v2105_v25 = vld [vmem:[%s2552_s3 + $0x4c] sm:$0xf0] }
  0x4e   : > { %1389 = vmatpush.bf16.msrb.mxu3 %v2155_v28  ;;  %1341 = vmatmul.bf16.gmra.mxu0 %v683_v31  ;;  %v1499_v28 = vld [vmem:[%s2468_s30 + $0x28] sm:$0xff]  ;;  %v1708_v31 = vor.u32 %v2105_v25, %v1707_v24 }
  0x4f   : > { %1404 = vmatpush.bf16.msra.mxu0 %v2166_v27  ;;  %1354 = vmatmul.bf16.vlgmr.msrb.gmra.mxu1 %v1692_v41  ;;  %v1709_v27 = vld [vmem:[%s2552_s3 + $0x50] sm:$0xf0]  ;;  %v1717_v41 = vld [vmem:[%s2552_s3 + $0x58] sm:$0xf0] }
  0x50   : > { %1418 = vmatpush.bf16.msra.mxu1 %v2178_v35  ;;  %1372 = vmatmul.bf16.vlgmr.msrb.gmra.mxu2 %v1696_v43  ;;  %v1712_v33 = vor.u32 %v2099_v26, %v1709_v27  ;;  %v1497_v35 = vld [vmem:[%s2468_s30 + $0x18] sm:$0xff]  ;;  %v1720_v44 = vor.u32 %v2100_v40, %v1717_v41 }
  0x51   : > { %1436 = vmatpush.bf16.msra.mxu2 %v2186_v30  ;;  %1390 = vmatmul.bf16.vlgmr.msrb.gmra.mxu3 %v1700_v45  ;;  %v2106_v30 = vld [vmem:[%s2552_s3 + $0x54] sm:$0xf0] }
  0x52   : > { %1454 = vmatpush.bf16.msra.mxu3 %v2194_v36  ;;  %v1716_v34 = vor.u32 %v2106_v30, %v1715_v29  ;;  %v1496_v36 = vld [vmem:[%s2468_s30 + $0x10] sm:$0xff] }
  0x53   : > { %1405 = vmatpush.bf16.msra.mxu0 %v2165_v38  ;;  %v429_v38 = vld [vmem:[%s2552_s3 + $0x80] sm:$0xff] }
  0x54   : > { %1419 = vmatpush.bf16.msra.mxu1 %v2177_v46  ;;  %v664_v43 = vunpack.c.l.b16 %v429_v38  ;;  %v665_v45 = vunpack.c.h.b16 %v429_v38 }
  0x55   : > { %1437 = vmatpush.bf16.msra.mxu2 %v2185_v42  ;;  %v430_v42 = vld [vmem:[%s2552_s3 + $0x88] sm:$0xff] }
  0x56   : > { %1455 = vmatpush.bf16.msra.mxu3 %v2193_v48  ;;  %v666_v46 = vunpack.c.l.b16 %v430_v42  ;;  %v689_v48 = vpack.c.b16 %v665_v45, %v665_v45 }
  0x57   : > { %1406 = vmatpush.bf16.msra.mxu0 %v2164_v47  ;;  %v688_v47 = vpack.c.b16 %v664_v43, %v664_v43 }
  0x58   : > { %1420 = vmatpush.bf16.msra.mxu1 %v2176_v51  ;;  %v690_v50 = vpack.c.b16 %v666_v46, %v666_v46  ;;  %v2225_v51 = vmov 0   ;;  %v1544_v46 = vld [vmem:[%s346_s21] sm:$0x7] }
  0x59   : > { %1438 = vmatpush.bf16.msra.mxu2 %v2184_v49  ;;  %v1545_v49 = vld [vmem:[%s2556_s7] sm:$0xff]  ;;  %2216 = vset.pattern.permute.xlu0 %v2225_v51  ;;  %v1552_v51 = vperm.slane %v1544_v46, 0 }
  0x5a   : > { %1456 = vmatpush.bf16.msra.mxu3 %v2192_v53  ;;  %1548 = vperm.xlu0 %2216, %v1545_v49  }
  0x5b   : > { %1407 = vmatpush.bf16.msra.mxu0 %v2163_v52  ;;  %v667_v52 = vunpack.c.h.b16 %v430_v42 }
  0x5c   : > { %1421 = vmatpush.bf16.msra.mxu1 %v2175_v59 }
  0x5d   : > { %1439 = vmatpush.bf16.msra.mxu2 %v2183_v54  ;;  %v691_v53 = vpack.c.b16 %v667_v52, %v667_v52  ;;  %v1490_v54 = vld [vmem:[%s2554_s5] sm:$0xff] }
  0x5e   : > { %1457 = vmatpush.bf16.msra.mxu3 %v2191_v60  ;;  %1408 = vmatmul.bf16.vlgmr.msra.gmra.mxu0 %v1704_v1 }
  0x5f   : > { %1476 = vmatpush.bf16.msrb.mxu0 %v1272_v56  ;;  %1359 = vmatmul.bf16.gmra.mxu1 %v684_v6  ;;  %v1491_v56 = vld [vmem:[%s2554_s5 + $0x8] sm:$0xff] }
  0x60   : > { %1422 = vmatpush.bf16.msra.mxu1 %v2174_v3  ;;  %1377 = vmatmul.bf16.gmra.mxu2 %v685_v8 }
  0x61   : > { %1440 = vmatpush.bf16.msra.mxu2 %v2182_v63  ;;  %1395 = vmatmul.bf16.gmra.mxu3 %v686_v10 }
  0x62   : > { %1458 = vmatpush.bf16.msra.mxu3 %v2190_v5 }
  0x63   : > { %1477 = vmatpush.bf16.msrb.mxu0 %v2197_v0 }
  0x64   : > { %1423 = vmatpush.bf16.msra.mxu1 %v2173_v11 }
  0x65   : > { %1441 = vmatpush.bf16.msra.mxu2 %v2181_v7 }
  0x66   : > { %1459 = vmatpush.bf16.msra.mxu3 %v2189_v12 }
  0x67   : > { %1478 = vmatpush.bf16.msrb.mxu0 %v2196_v9 }
  0x68   : > { %1424 = vmatpush.bf16.msra.mxu1 %v2172_v15 }
  0x69   : > { %1442 = vmatpush.bf16.msra.mxu2 %v2180_v13 }
  0x6a   : > { %1460 = vmatpush.bf16.msra.mxu3 %v2188_v16 }
  0x6b   : > { %1479 = vmatpush.bf16.msrb.mxu0 %v2195_v14 }
  0x6c   : > { %1425 = vmatpush.bf16.msra.mxu1 %v2171_v19 }
  0x6d   : > { %1443 = vmatpush.bf16.msra.mxu2 %v2179_v17 }
  0x6e   : > { %1461 = vmatpush.bf16.msra.mxu3 %v2187_v21  ;;  %1413 = vmatmul.bf16.gmra.mxu0 %v687_v23 }
  0x6f   : > { %1426 = vmatmul.bf16.vlgmr.msra.gmra.mxu1 %v1708_v31 }
  0x70   : > { %1523 = vmatpush.msrb.mxu1 %v1501_v20  ;;  %1444 = vmatmul.bf16.vlgmr.msra.gmra.mxu2 %v1712_v33 }
  0x71   : > { %2198 = vmatpush.msrb.mxu2 %v1501_v20  ;;  %1462 = vmatmul.bf16.vlgmr.msra.gmra.mxu3 %v1716_v34 }
  0x72   : > { %1524 = vmatpush.msrb.mxu1 %v1500_v22 }
  0x73   : > { %2199 = vmatpush.msrb.mxu2 %v1500_v22 }
  0x74   : > { %1525 = vmatpush.msrb.mxu1 %v1499_v28 }
  0x75   : > { %2200 = vmatpush.msrb.mxu2 %v1499_v28 }
  0x76   : > { %1526 = vmatpush.msrb.mxu1 %v1498_v32 }
  0x77   : > { %2201 = vmatpush.msrb.mxu2 %v1498_v32 }
  0x78   : > { %1527 = vmatpush.msrb.mxu1 %v1497_v35 }
  0x79   : > { %2202 = vmatpush.msrb.mxu2 %v1497_v35 }
  0x7a   : > { %1528 = vmatpush.msrb.mxu1 %v1496_v36 }
  0x7b   : > { %2203 = vmatpush.msrb.mxu2 %v1496_v36 }
  0x7c   : > { %1529 = vmatpush.msrb.mxu1 %v1495_v37 }
  0x7d   : > { %2204 = vmatpush.msrb.mxu2 %v1495_v37 }
  0x7e   : > { %1530 = vmatpush.msrb.mxu1 %v1494_v39  ;;  %2085 = vmatmul.msk.bf16.vlgmr.msrb.gmra.mxu0 %vm1263_vm3, %v1720_v44 }
  0x7f   : > { %2205 = vmatpush.msrb.mxu2 %v1494_v39  ;;  %1431 = vmatmul.bf16.gmra.mxu1 %v688_v47 }
  0x80   : > { %1449 = vmatmul.bf16.gmra.mxu2 %v689_v48 }
  0x81   : > { %1467 = vmatmul.bf16.gmra.mxu3 %v690_v50 }
  0x8e   : > { %2086 = vmatmul.msk.bf16.gmra.mxu0 %vm1263_vm3, %v691_v53 }
  0x8f   : > { %2087 = vmatmul.msk.f32.vlgmr.msrb.gmra.mxu1 %vm1502_vm4, %v1490_v54 }
  0x90   : > { %2089 = vmatmul.msk.f32.vlgmr.msrb.gmra.mxu2 %vm1502_vm4, %v1492_v55 }
  0x97   : > { %2088 = vmatmul.msk.f32.gmra.mxu1 %vm1502_vm4, %v1491_v56 }
  0x98   : > { %2090 = vmatmul.msk.f32.gmra.mxu2 %vm1502_vm4, %v1493_v57 }
  0x9b   : > { %v2529_v58 = vpop.f32.mrf.mxu0 }
  0x9c   : > { %v1553_v57 = vadd.f32 %v1552_v51, %v2529_v58 }
  0xa3   : > { %v2531_v59 = vpop.f32.mrf.mxu0 }
  0xab   : > { %v2533_v61 = vpop.f32.mrf.mxu0 }
  0xac   : > { %v1283_v60 = vpop.f32.mrf.mxu1 }
  0xb3   : > { %v1301_v62 = vpop.f32.mrf.mxu2 }
  0xb4   : > { %v1302_v63 = vadd.f32 %v1301_v62, %v1283_v60  ;;  %v1285_v0 = vpop.f32.mrf.mxu1  ;;  %v1319_v1 = vpop.f32.mrf.mxu3 }
  0xb6   : > { %v1320_v2 = vadd.f32 %v1319_v1, %v1302_v63 }
  0xbb   : > { %v1337_v3 = vpop.f32.mrf.mxu0  ;;  %v1303_v5 = vpop.f32.mrf.mxu2 }
  0xbc   : > { %v1338_v4 = vadd.f32 %v1337_v3, %v1320_v2  ;;  %v1304_v6 = vadd.f32 %v1303_v5, %v1285_v0  ;;  %v1288_v7 = vpop.f32.mrf.mxu1  ;;  %v1321_v8 = vpop.f32.mrf.mxu3  ;;  %v1557_v5 = vperm.slane %v1544_v46, 1 }
  0xbe   : > { %v1322_v9 = vadd.f32 %v1321_v8, %v1304_v6 }
  0xc3   : > { %v1339_v10 = vpop.f32.mrf.mxu0  ;;  %v1306_v12 = vpop.f32.mrf.mxu2 }
  0xc4   : > { %v1340_v11 = vadd.f32 %v1339_v10, %v1322_v9  ;;  %v1307_v13 = vadd.f32 %v1306_v12, %v1288_v7  ;;  %v1290_v14 = vpop.f32.mrf.mxu1  ;;  %v1324_v15 = vpop.f32.mrf.mxu3  ;;  %v1558_v10 = vadd.f32 %v1557_v5, %v2531_v59 }
  0xc6   : > { %v1325_v16 = vadd.f32 %v1324_v15, %v1307_v13 }
  0xcb   : > { %v1342_v17 = vpop.f32.mrf.mxu0  ;;  %v1308_v19 = vpop.f32.mrf.mxu2 }
  0xcc   : > { %v1343_v18 = vadd.f32 %v1342_v17, %v1325_v16  ;;  %v1326_v20 = vpop.f32.mrf.mxu3  ;;  %v1355_v21 = vpop.f32.mrf.mxu1  ;;  %v1562_v17 = vperm.slane %v1544_v46, 2 }
  0xcd   : > { %v1356_v34 = vadd.f32 %v1355_v21, %v1338_v4 }
  0xce   : > { %v1563_v20 = vadd.f32 %v1562_v17, %v2533_v61 }
  0xd3   : > { %v1344_v22 = vpop.f32.mrf.mxu0  ;;  %v1373_v23 = vpop.f32.mrf.mxu2 }
  0xd4   : > { %v1357_v24 = vpop.f32.mrf.mxu1  ;;  %v1391_v25 = vpop.f32.mrf.mxu3  ;;  %v1374_v36 = vadd.f32 %v1373_v23, %v1356_v34 }
  0xd5   : > { %v1358_v41 = vadd.f32 %v1357_v24, %v1340_v11 }
  0xd6   : > { %v1392_v40 = vadd.f32 %v1391_v25, %v1374_v36 }
  0xdb   : > { %v1409_v26 = vpop.f32.mrf.mxu0  ;;  %v1375_v27 = vpop.f32.mrf.mxu2 }
  0xdc   : > { %v1360_v28 = vpop.f32.mrf.mxu1  ;;  %v1393_v29 = vpop.f32.mrf.mxu3  ;;  %v1410_v42 = vadd.f32 %v1409_v26, %v1392_v40  ;;  %v1376_v44 = vadd.f32 %v1375_v27, %v1358_v41 }
  0xdd   : > { %v1361_v53 = vadd.f32 %v1360_v28, %v1343_v18  ;;  %v1549_v27 = vpop.permute.xlu0 %1548 }
  0xde   : > { %v1394_v52 = vadd.f32 %v1393_v29, %v1376_v44 }
  0xe3   : > { %v1411_v30 = vpop.f32.mrf.mxu0  ;;  %v1378_v31 = vpop.f32.mrf.mxu2 }
  0xe4   : > { %v1362_v32 = vpop.f32.mrf.mxu1  ;;  %v1396_v33 = vpop.f32.mrf.mxu3  ;;  %v1412_v54 = vadd.f32 %v1411_v30, %v1394_v52  ;;  %v1379_v60 = vadd.f32 %v1378_v31, %v1361_v53 }
  0xe6   : > { %v1397_v6 = vadd.f32 %v1396_v33, %v1379_v60 }
  0xeb   : > { %v1414_v35 = vpop.f32.mrf.mxu0  ;;  %v1380_v37 = vpop.f32.mrf.mxu2 }
  0xec   : > { %v1398_v38 = vpop.f32.mrf.mxu3  ;;  %v1427_v39 = vpop.f32.mrf.mxu1  ;;  %v1415_v7 = vadd.f32 %v1414_v35, %v1397_v6 }
  0xed   : > { %v1428_v45 = vadd.f32 %v1427_v39, %v1410_v42 }
  0xf3   : > { %v1416_v43 = vpop.f32.mrf.mxu0  ;;  %v1445_v47 = vpop.f32.mrf.mxu2 }
  0xf4   : > { %v1446_v48 = vadd.f32 %v1445_v47, %v1428_v45  ;;  %v1429_v49 = vpop.f32.mrf.mxu1  ;;  %v1463_v50 = vpop.f32.mrf.mxu3 }
  0xf5   : > { %v1430_v62 = vadd.f32 %v1429_v49, %v1412_v54 }
  0xf6   : > { %v1464_v55 = vadd.f32 %v1463_v50, %v1446_v48 }
  0xfb   : > { %v1481_v56 = vpop.f32.mrf.mxu0  ;;  %v1447_v0 = vpop.f32.mrf.mxu2 }
  0xfc   : > { %v1482_v63 = vadd.f32 %v1481_v56, %v1464_v55  ;;  %v1448_v1 = vadd.f32 %v1447_v0, %v1430_v62  ;;  %v1432_v2 = vpop.f32.mrf.mxu1  ;;  %v1465_v3 = vpop.f32.mrf.mxu3 }
  0xfd   : > { %v1433_v11 = vadd.f32 %v1432_v2, %v1415_v7 }
  0xfe   : > { %v1554_v4 = vadd.f32 %v1553_v57, %v1482_v63  ;;  %v1466_v8 = vadd.f32 %v1465_v3, %v1448_v1 }
 0x103   : > { %v1483_v9 = vpop.f32.mrf.mxu0  ;;  %v1450_v13 = vpop.f32.mrf.mxu2 }
 0x104   : > { %v1484_v12 = vadd.f32 %v1483_v9, %v1466_v8  ;;  %v1451_v14 = vadd.f32 %v1450_v13, %v1433_v11  ;;  %v1434_v58 = vpop.f32.mrf.mxu1  ;;  %v1468_v15 = vpop.f32.mrf.mxu3 }
 0x106   : > { %v1559_v16 = vadd.f32 %v1558_v10, %v1484_v12  ;;  %v1469_v18 = vadd.f32 %v1468_v15, %v1451_v14 }
 0x10b   : > { %v1486_v19 = vpop.f32.mrf.mxu0  ;;  %v1452_v22 = vpop.f32.mrf.mxu2 }
 0x10c   : > { %v1487_v21 = vadd.f32 %v1486_v19, %v1469_v18  ;;  %v1470_v24 = vpop.f32.mrf.mxu3  ;;  %v1532_v25 = vpop.f32.mrf.mxu1 }
 0x10d   : > { %v1555_v30 = vmul.f32 %v1554_v4, %v1532_v25 }
 0x10e   : > { %v1564_v23 = vadd.f32 %v1563_v20, %v1487_v21 }
 0x113   : > { %v1488_v26 = vpop.f32.mrf.mxu0  ;;  %v1538_v59 = vpop.f32.mrf.mxu2 }
 0x114   : > { %v1535_v28 = vpop.f32.mrf.mxu1  ;;  %v1565_v34 = vmul.f32 %v1564_v23, %v1538_v59 }
 0x115   : > { %v1560_v32 = vmul.f32 %v1559_v16, %v1535_v28 }
 0x11b   : > { %v1541_v29 = vpop.f32.mrf.mxu2 }
 0x11c   : > { %v1551_v31 = vadd.f32 %v1549_v27, %v1541_v29 }
 0x11e   : > { %v1556_v33 = vadd.f32 %v1555_v30, %v1551_v31 }
 0x120   : > { %v1561_v35 = vadd.f32 %v1560_v32, %v1556_v33 }
 0x122   : > { %v1566_v61 = vadd.f32 %v1565_v34, %v1561_v35 }
 0x124   : > { %1567 = vst [vmem:[%s360_s25] sm:$0xff] %v1566_v61 }
 0x125 PF: > { %s18_s27 = sadd.s32 1, %s2223_s27  }
 0x126   : > { %p15_p4 = scmp.ge.s32.totalorder %s18_s27, 4  }
 0x128   :  { %17 = sbr.rel (!%p15_p4) target bundleno = 1 (0x1), region = 91 }

</bundles_post_ra>
